<compile_context>
chip_gen: v7x
topology: tpu7x:2x2x1
jax: 0.10.0
libtpu: 0.0.40
codegen_flags: <defaults>
</compile_context>

<pallas_src>
import functools

import jax
import jax.numpy as jnp
from jax.experimental import pallas as pl
from jax.experimental.pallas import tpu as pltpu

BN_EPS = 1e-5
LANE = 128
CHUNK_ROWS = 256          # rows per in-kernel sub-chunk (bounds f32 intermediates)


def _round_up(x, m):
    return ((x + m - 1) // m) * m


def _sublane(dtype):
    # Sublane packing multiple: f32 -> 8, bf16 -> 16, int8/fp8 -> 32.
    return max(8, 32 // jnp.dtype(dtype).itemsize)


def _vmem_capacity_bytes():
    try:
        cap = getattr(pltpu.get_tpu_info(), "vmem_capacity_bytes", None)
        if cap:
            return int(cap)
    except Exception:
        pass
    return 64 << 20   # conservative default (v7x per-TensorCore VMEM)


def _row_chunk_loop(nrow, chunk, compute):
    """Run compute(row_start, rows) over <=chunk-row slices of the current tile."""
    if nrow <= chunk:
        compute(0, nrow)
        return
    n_full = nrow // chunk

    def body(c, carry):
        compute(pl.multiple_of(c * chunk, chunk), chunk)
        return carry

    jax.lax.fori_loop(0, n_full, body, 0, unroll=True)
    rem = nrow - n_full * chunk
    if rem:                      # static tail (nrow, chunk are Python ints)
        compute(n_full * chunk, rem)


# ---------------------------- kernels ----------------------------------------

def _fused_kernel(x_ref, w_ref, bias_ref, o_ref, *, chunk):
    # Single matmul: out = x @ W_comb + bias (BN + both projections pre-folded).
    def compute(r0, rows):
        xs = x_ref[pl.ds(r0, rows), :].astype(w_ref.dtype)
        acc = jnp.dot(xs, w_ref[...], preferred_element_type=jnp.float32)
        o_ref[pl.ds(r0, rows), :] = (acc + bias_ref[...]).astype(o_ref.dtype)

    _row_chunk_loop(x_ref.shape[0], chunk, compute)


def _two_stage_kernel(x_ref, wb_ref, coef_ref, bias_ref, o_ref, *, chunk):
    # Factorized path: out = ((x @ wb_bn) @ coef) + bias. Used only when the
    # lane-padded factorization is cheaper than the combined matmul.
    def compute(r0, rows):
        xs = x_ref[pl.ds(r0, rows), :].astype(wb_ref.dtype)
        y = jnp.dot(xs, wb_ref[...], preferred_element_type=jnp.float32)
        # When compute dtype is bf16 the intermediate is cast to bf16 before the
        # second dot (factorized bf16 precision, documented deviation from f32).
        z = jnp.dot(y.astype(coef_ref.dtype), coef_ref[...],
                    preferred_element_type=jnp.float32)
        o_ref[pl.ds(r0, rows), :] = (z + bias_ref[...]).astype(o_ref.dtype)

    _row_chunk_loop(x_ref.shape[0], chunk, compute)


# ---------------------------- wrapper -----------------------------------------

def prepare_basis_linear(basis_weight, gamma, beta, running_mean, running_var,
                         coefficients, bias, *, compute_dtype=None,
                         two_stage=None):
    """One-time weight preparation: BN fold, path selection, transpose, pad.

    The returned dict is reused across calls; only x handling remains in the
    per-call hot path (basis_linear_apply)."""
    B, IN = basis_weight.shape
    B2, OUT = coefficients.shape
    assert B2 == B
    f32 = jnp.float32
    cdt = jnp.dtype(compute_dtype) if compute_dtype is not None \
        else jnp.dtype(basis_weight.dtype)

    # Fold eval-mode BatchNorm into the basis weights / bias (in f32).
    inv_std = gamma.astype(f32) * jax.lax.rsqrt(running_var.astype(f32) + BN_EPS)
    wb_eff = basis_weight.astype(f32) * inv_std[:, None]             # (B, IN)
    shift = beta.astype(f32) - running_mean.astype(f32) * inv_std    # (B,)
    bias_eff = shift @ coefficients.astype(f32)                      # (OUT,)
    if bias is not None:
        bias_eff = bias_eff + bias.astype(f32)

    B_p = _round_up(B, LANE)
    OUT_p = _round_up(OUT, LANE)

    # Two-stage only pays off when the lane-padded factorization is cheaper.
    if two_stage is None:
        two_stage = B_p * (IN + OUT_p) < IN * OUT_p

    bias_p = jnp.pad(bias_eff, (0, OUT_p - OUT)).reshape(1, OUT_p)   # f32

    if two_stage:
        wb_p = jnp.pad(wb_eff.T.astype(cdt), ((0, 0), (0, B_p - B)))          # (IN, B_p)
        coef_p = jnp.pad(coefficients.astype(cdt),
                         ((0, B_p - B), (0, OUT_p - OUT)))                    # (B_p, OUT_p)
        weights = (wb_p, coef_p)
    else:
        w_comb = wb_eff.T @ coefficients.astype(f32)                          # (IN, OUT)
        weights = (jnp.pad(w_comb.astype(cdt), ((0, 0), (0, OUT_p - OUT))),)  # (IN, OUT_p)

    return dict(two_stage=bool(two_stage), weights=weights, bias=bias_p,
                in_features=IN, out_features=OUT, basis_features=B, b_p=B_p)


def basis_linear_apply(x, prepared, *, tile_n=None, out_dtype=None):
    N, IN = x.shape
    assert IN == prepared["in_features"]
    two_stage = prepared["two_stage"]
    weights = prepared["weights"]
    bias_p = prepared["bias"]
    OUT = prepared["out_features"]
    B = prepared["basis_features"]
    B_p = prepared["b_p"]
    OUT_p = bias_p.shape[1]
    cdt = weights[0].dtype
    out_dtype = jnp.dtype(out_dtype) if out_dtype is not None else x.dtype

    # ---- Row-tile selection (generation aware via the VMEM budget below). ----
    sub = max(_sublane(x.dtype), _sublane(out_dtype))
    if tile_n is None:
        tile_n = 2048 if IN <= 512 else 1024   # HBM-bound: big tiles amortize grid overhead
    tile = min(_round_up(tile_n, sub), _round_up(N, sub))
    # Give the "parallel" grid axis >=2 steps when N permits (v7x has 2 TCs).
    if N > sub and pl.cdiv(N, tile) < 2:
        tile = _round_up(pl.cdiv(N, 2), sub)

    vmem_cap = _vmem_capacity_bytes()
    vmem_limit = min(int(0.75 * vmem_cap), 100 << 20)   # ~48 MiB v7x, ~96 MiB v5e/v6e

    IN_l = _round_up(IN, LANE)                 # x tile is lane-padded in VMEM
    x_isz = jnp.dtype(x.dtype).itemsize
    o_isz = jnp.dtype(out_dtype).itemsize
    c_isz = jnp.dtype(cdt).itemsize

    def vmem_needed(t):
        chunk = min(t, CHUNK_ROWS)
        need = 2 * t * IN_l * x_isz            # double-buffered x tiles (lane padded)
        need += 2 * t * OUT_p * o_isz          # double-buffered out tiles
        need += 2 * OUT_p * 4                  # bias
        if two_stage:
            need += 2 * (IN_l * B_p + B_p * OUT_p) * c_isz   # resident weights
            need += chunk * (B_p + OUT_p) * 4                # f32 intermediates
        else:
            need += 2 * IN_l * OUT_p * c_isz
            need += chunk * OUT_p * 4
        return need

    while tile > sub and vmem_needed(tile) > int(0.8 * vmem_limit):
        tile = max(sub, _round_up(tile // 2, sub))

    chunk = min(tile, CHUNK_ROWS)
    grid = (pl.cdiv(N, tile),)

    if two_stage:
        kernel = functools.partial(_two_stage_kernel, chunk=chunk)
        w_specs = [pl.BlockSpec((IN, B_p), lambda i: (0, 0)),
                   pl.BlockSpec((B_p, OUT_p), lambda i: (0, 0))]
        flops = 2 * N * IN * B + 2 * N * B * OUT
        w_bytes = (IN * B_p + B_p * OUT_p) * c_isz
    else:
        kernel = functools.partial(_fused_kernel, chunk=chunk)
        w_specs = [pl.BlockSpec((IN, OUT_p), lambda i: (0, 0))]
        flops = 2 * N * IN * OUT
        w_bytes = IN * OUT_p * c_isz

    cost = pl.CostEstimate(
        flops=flops, transcendentals=0,
        bytes_accessed=N * IN * x_isz + w_bytes + OUT_p * 4 + N * OUT_p * o_isz)

    out_p = pl.pallas_call(
        kernel,
        out_shape=jax.ShapeDtypeStruct((N, OUT_p), out_dtype),
        grid=grid,
        in_specs=([pl.BlockSpec((tile, IN), lambda i: (i, 0))]      # x rows (pipelined)
                  + w_specs                                          # weights (VMEM resident)
                  + [pl.BlockSpec((1, OUT_p), lambda i: (0, 0))]),   # folded bias
        out_specs=pl.BlockSpec((tile, OUT_p), lambda i: (i, 0)),
        compiler_params=pltpu.CompilerParams(
            dimension_semantics=("parallel",),
            vmem_limit_bytes=int(vmem_limit)),
        cost_estimate=cost,
    )(x, *weights, bias_p)

    return out_p if OUT_p == OUT else out_p[:, :OUT]


def basis_linear(x, basis_weight, gamma, beta, running_mean, running_var,
                 coefficients, bias, **kwargs):
    """One-shot convenience wrapper. For repeated calls, do prepare once and
    reuse it (weight prep is the expensive, HBM-touching part)."""
    prep_kw = {k: kwargs.pop(k) for k in ("compute_dtype", "two_stage")
               if k in kwargs}
    prepared = prepare_basis_linear(basis_weight, gamma, beta, running_mean,
                                    running_var, coefficients, bias, **prep_kw)
    return basis_linear_apply(x, prepared, **kwargs)


# ---------------------------- test harness ------------------------------------

def build_params(key, in_features, out_features, basis_features):
    """Deterministic parameter construction mirroring basisLinear.__init__
    with use_weights=True, sparse_filters=False, trainable_basis=True."""
    k_w, k_b, k_g, k_be, k_m, k_v = jax.random.split(key, 6)

    org_weight = jax.random.normal(k_w, (out_features, in_features),
                                   jnp.float32) / jnp.sqrt(in_features)
    org_bias = jax.random.normal(k_b, (out_features,), jnp.float32) * 0.1

    # calc_eig(org_weight, sparse_filters=False): SVD, phi = right singular
    # vectors sorted by descending singular value.
    _, s, vh = jnp.linalg.svd(org_weight, full_matrices=False)
    order = jnp.argsort(-s)
    phi = vh.T[:, order]

    # update_channels: ef = phi[:, :B].T ; coefficients = ef @ org_weight.T
    ef = phi[:, :basis_features].T
    basis_weight = ef
    coefficients = ef @ org_weight.T

    # BatchNorm1d(basis_features) parameters / running stats (eval-mode).
    gamma = 1.0 + 0.1 * jax.random.normal(k_g, (basis_features,), jnp.float32)
    beta = 0.1 * jax.random.normal(k_be, (basis_features,), jnp.float32)
    running_mean = 0.1 * jax.random.normal(k_m, (basis_features,), jnp.float32)
    running_var = 1.0 + 0.1 * jax.random.uniform(k_v, (basis_features,),
                                                 jnp.float32)

    return (basis_weight, gamma, beta, running_mean, running_var,
            coefficients, org_bias)


def reference(x, basis_weight, gamma, beta, running_mean, running_var,
              coefficients, bias):
    y = x @ basis_weight.T
    y = (y - running_mean) / jnp.sqrt(running_var + BN_EPS) * gamma + beta
    return y @ coefficients + bias


if __name__ == "__main__":
    N, IN, OUT, B = 8, 32, 64, 16

    key = jax.random.PRNGKey(0)
    k_params, k_x, k_x2 = jax.random.split(key, 3)
    params = build_params(k_params, IN, OUT, B)
    x = jax.random.normal(k_x, (N, IN), jnp.float32)
    ref = reference(x, *params)

    # 1) Default path (combined single matmul auto-selected), f32 compute.
    prepared = prepare_basis_linear(*params)
    assert not prepared["two_stage"]
    out = jax.block_until_ready(basis_linear_apply(x, prepared))
    assert out.shape == (N, OUT)
    assert jnp.allclose(out, ref, atol=1e-4, rtol=1e-4), \
        f"combined path: max abs err = {jnp.max(jnp.abs(out - ref))}"

    # 2) Forced two-stage (factorized) path, f32 compute.
    prepared2 = prepare_basis_linear(*params, two_stage=True)
    out2 = jax.block_until_ready(basis_linear_apply(x, prepared2))
    assert jnp.allclose(out2, ref, atol=1e-4, rtol=1e-4), \
        f"two-stage path: max abs err = {jnp.max(jnp.abs(out2 - ref))}"

    # 3) bf16 compute path (bf16 weights, in-kernel x cast, f32 MXU accumulation).
    prepared_bf16 = prepare_basis_linear(*params, compute_dtype=jnp.bfloat16)
    out_bf16 = jax.block_until_ready(basis_linear_apply(x, prepared_bf16))
    assert jnp.allclose(out_bf16, ref, atol=0.2, rtol=0.2), \
        f"bf16 path: max abs err = {jnp.max(jnp.abs(out_bf16 - ref))}"

    # 4) Larger batch reusing the SAME prepared weights: exercises the
    #    multi-step parallel grid, a partial last row-block (no x padding copy),
    #    and the in-kernel sub-chunk loop.
    x_big = jax.random.normal(k_x2, (520, IN), jnp.float32)
    ref_big = reference(x_big, *params)
    out_big = jax.block_until_ready(
        basis_linear_apply(x_big, prepared, tile_n=512))
    assert out_big.shape == (520, OUT)
    assert jnp.allclose(out_big, ref_big, atol=1e-4, rtol=1e-4), \
        f"large-N path: max abs err = {jnp.max(jnp.abs(out_big - ref_big))}"

    print("KERNEL_OK")
</pallas_src>

<mosaic_0001>
module attributes {stable_mosaic.version = 11 : i64} {
  func.func @_fused_kernel(%arg0: i32, %arg1: memref<8x32xf32, #tpu.memory_space<vmem>>, %arg2: memref<32x128xf32, #tpu.memory_space<vmem>>, %arg3: memref<1x128xf32, #tpu.memory_space<vmem>>, %arg4: memref<8x128xf32, #tpu.memory_space<vmem>>) attributes {dimension_semantics = [#tpu.dimension_semantics<parallel>], iteration_bounds = array<i64: 1>, scalar_prefetch = 0 : i64, scratch_operands = 0 : i64, tpu.core_type = #tpu.core_type<tc>, window_params = [{transform_indices = @transform_0, window_bounds = array<i64: 8, 32>}, {pipeline_mode = #tpu.pipeline_mode<synchronous>, transform_indices = @transform_1, window_bounds = array<i64: 32, 128>}, {pipeline_mode = #tpu.pipeline_mode<synchronous>, transform_indices = @transform_2, window_bounds = array<i64: 1, 128>}, {transform_indices = @transform_3, window_bounds = array<i64: 8, 128>}]} {
    %c0 = arith.constant 0 : index
    %c0_0 = arith.constant 0 : index
    %0 = vector.load %arg1[%c0, %c0_0] : memref<8x32xf32, #tpu.memory_space<vmem>>, vector<8x32xf32>
    %c0_1 = arith.constant 0 : index
    %c0_2 = arith.constant 0 : index
    %1 = vector.load %arg2[%c0_1, %c0_2] : memref<32x128xf32, #tpu.memory_space<vmem>>, vector<32x128xf32>
    %cst = arith.constant dense<0.000000e+00> : vector<8x128xf32>
    %2 = tpu.matmul %0, %1, %cst {dimension_numbers = #tpu.dot_dimension_numbers<[1], [0], [0], [1], [0, 0, 1, 1], [], []>} : vector<8x32xf32>, vector<32x128xf32>, vector<8x128xf32> -> vector<8x128xf32>
    %c0_3 = arith.constant 0 : index
    %c0_4 = arith.constant 0 : index
    %3 = vector.load %arg3[%c0_3, %c0_4] : memref<1x128xf32, #tpu.memory_space<vmem>>, vector<1x128xf32>
    %4 = vector.broadcast %3 : vector<1x128xf32> to vector<8x128xf32>
    %5 = arith.addf %2, %4 : vector<8x128xf32>
    %c0_5 = arith.constant 0 : index
    %c0_6 = arith.constant 0 : index
    %6 = vector.load %arg4[%c0_5, %c0_6] : memref<8x128xf32, #tpu.memory_space<vmem>>, vector<8x128xf32>
    tpu.vector_store %arg4[%c0_5, %c0_6], %5 {strides = array<i32>} : memref<8x128xf32, #tpu.memory_space<vmem>>, vector<8x128xf32>,
    return
  }
  func.func @transform_0(%arg0: i32) -> (i32, i32) {
    %c0_i32 = arith.constant 0 : i32
    %c0_i32_0 = arith.constant 0 : i32
    return %arg0, %c0_i32 : i32, i32
  }
  func.func @transform_1(%arg0: i32) -> (i32, i32) {
    %c0_i32 = arith.constant 0 : i32
    %c0_i32_0 = arith.constant 0 : i32
    %c0_i32_1 = arith.constant 0 : i32
    return %c0_i32, %c0_i32_0 : i32, i32
  }
  func.func @transform_2(%arg0: i32) -> (i32, i32) {
    %c0_i32 = arith.constant 0 : i32
    %c0_i32_0 = arith.constant 0 : i32
    %c0_i32_1 = arith.constant 0 : i32
    return %c0_i32, %c0_i32_0 : i32, i32
  }
  func.func @transform_3(%arg0: i32) -> (i32, i32) {
    %c0_i32 = arith.constant 0 : i32
    %c0_i32_0 = arith.constant 0 : i32
    return %arg0, %c0_i32 : i32, i32
  }
}

</mosaic_0001>

<bundles_post_ra>
// kernel: tpu_custom_call.1
= control target key start
LH: loop header
LB: loop body
LE: loop exit
PB: predicated region body
PF: predicated region fallthrough
CT: control target
= control target key end

     0   :  { %8 = vsyncpa [#allocation3], 0  ;;  %s322_s0 = inlined_call_operand.hbm [shape: f32[8,32], index: 0, kind: input, shape index: {}]   ;;  %s323_s1 = inlined_call_operand.hbm [shape: f32[32,128], index: 1, kind: input, shape index: {}]   ;;  %s324_s2 = inlined_call_operand.vmem [shape: f32[1,128], index: 2, kind: input, shape index: {}]   ;;  %s325_s3 = inlined_call_operand.hbm [shape: f32[8,128], index: 3, kind: output, shape index: {}]  }
   0x1   :  { %9 = vsyncpa [#allocation6], 0 }
   0x2   :  { %10 = vsyncpa [#allocation4], 0  ;;  %s248_s12 = smov [#allocation2]   ;;  %s249_s14 = smov [#allocation5]  }
   0x3   :  { %s17_s13 = sshll.u32 %s248_s12, 4  ;;  %s26_s15 = sshll.u32 %s249_s14, 4  ;;  %s18_s13 = int_to_ptr.vmem [resolvable:$true] %s17_s13  ;;  %s276_s15 = int_to_ptr.vmem [resolvable:$true] %s26_s15 }
   0x4   :  { %s176_s18 = scalar_lea.hbm %s322_s0, 128 }
   0x5   :  { %p177_p0 = scmp.ne.s32.totalorder %s322_s0, %s176_s18  ;;  %p180_p1 = scmp.lt.u32.totalorder %s176_s18, %s322_s0 }
   0x7   :  { %p182_p2 = pnand %p180_p1, %p177_p0 }
   0x9   :  { %185 = shalt.err (!%p182_p2)
}
   0xa   :  { %s186_s23 = scalar_lea.vmem %s18_s13, 128  ;;  %p191_p4 = scmp.lt.s32.totalorder %s18_s13, %s18_s13 }
   0xb   :  { %p187_p3 = scmp.ne.s32.totalorder %s18_s13, %s186_s23  ;;  %p192_p5 = scmp.lt.s32.totalorder %s186_s23, %s186_s23 }
   0xd   :  { %p193_p6 = por %p192_p5, %p191_p4 }
   0xf   :  { %p194_p7 = pnand %p193_p6, %p187_p3 }
  0x11   :  { %197 = shalt.err (!%p194_p7)
}
  0x12   :  { %20 = dma.hbm_to_vmem [thread:$0]  %s322_s0, 128, %s18_s13, [#allocation3]  }
  0x13   :  { %s198_s28 = scalar_lea.hbm %s323_s1, 512 }
  0x14   :  { %p199_p8 = scmp.ne.s32.totalorder %s323_s1, %s198_s28  ;;  %p202_p9 = scmp.lt.u32.totalorder %s198_s28, %s323_s1 }
  0x16   :  { %p204_p10 = pnand %p202_p9, %p199_p8 }
  0x18   :  { %207 = shalt.err (!%p204_p10)
}
  0x19   :  { %s208_s6 = scalar_lea.vmem %s276_s15, 512  ;;  %p213_p12 = scmp.lt.s32.totalorder %s276_s15, %s276_s15 }
  0x1a   :  { %p209_p11 = scmp.ne.s32.totalorder %s276_s15, %s208_s6  ;;  %p214_p13 = scmp.lt.s32.totalorder %s208_s6, %s208_s6 }
  0x1c   :  { %p215_p0 = por %p214_p13, %p213_p12 }
  0x1e   :  { %p216_p1 = pnand %p215_p0, %p209_p11 }
  0x20   :  { %219 = shalt.err (!%p216_p1)
}
  0x21   :  { %s250_s0 = smov 128   ;;  %s251_s7 = smov 8  }
  0x22   :  { %32 = dma.hbm_to_vmem [thread:$0]  %s323_s1, 512, %s276_s15, [#allocation6], %s250_s0, %s250_s0, %s251_s7  }
  0x23   :  { %242 = dma.done.wait [#allocation3], 128  }
  0x24   :  { %243 = vsyncadd [#allocation3], 4294967168 }
  0x25   :  { %244 = dma.done.wait [#allocation6], 512  }
  0x26   :  { %245 = vsyncadd [#allocation6], 4294966784  ;;  %v252_v0 = vmov 0.0|0.0   ;;  %vm253_vm0 = vmmov 0   ;;  %v254_v1 = vmov 0.0   ;;  %v42_v2 = vld [vmem:[#allocation5] sm:$0xff] }
  0x27   :  { %162 = vmatprep.subr.bf16.mxu0 %v252_v0  ;;  %159 = vmatprep.mubr.msk.f32.mxu0 %vm253_vm0, %v254_v1  ;;  %v43_v3 = vld [vmem:[#allocation5 + $0x8] sm:$0xff]  ;;  %v44_v4 = vld [vmem:[#allocation5 + $0x10] sm:$0xff]  ;;  %v45_v6 = vld [vmem:[#allocation5 + $0x18] sm:$0xff]  ;;  %vm53_vm1 = vcmask 261120   ;;  %s255_s11 = smov [#allocation7]  }
  0x28   :  { %v163_v5 = vpack.c.bf16 %v43_v3, %v42_v2  ;;  %v166_v7 = vpack.c.bf16 %v45_v6, %v44_v4  ;;  %v41_v8 = vld [vmem:[#allocation2] sm:$0xff]  ;;  %s134_s12 = sshll.u32 %s255_s11, 4  ;;  %s135_s12 = int_to_ptr.vmem [resolvable:$true] %s134_s12 }
  0x29   :  { %v144_v9 = vld [vmem:[%s324_s2] ss:$0 sm:$0xff]  ;;  %s220_s13 = scalar_lea.vmem %s135_s12, 128  ;;  %p225_p3 = scmp.lt.s32.totalorder %s135_s12, %s135_s12 }
  0x2a   :  { %164 = vmatpush3.bf16.msra.mxu0 %v163_v5  ;;  %p221_p2 = scmp.ne.s32.totalorder %s135_s12, %s220_s13  ;;  %p226_p4 = scmp.lt.s32.totalorder %s220_s13, %s220_s13 }
  0x2b   :  { %165 = vmatprep.subr.bf16.mxu0 %v252_v0 }
  0x2c   :  { %p227_p5 = por %p226_p4, %p225_p3 }
  0x2e   :  { %167 = vmatpush3.bf16.msra.mxu0 %v166_v7  ;;  %p228_p6 = pnand %p227_p5, %p221_p2 }
  0x31   :  { %160 = vmatmul.mubr.msk.f32.vlgmr.msra.gmra.mrb[0].mxu0 %vm53_vm1, %v41_v8 }
 0x104   :  { %v123_v10 = vpop.f32.mrb[0].mxu0 }
 0x105   :  { %v124_v11 = vadd.f32 %v144_v9, %v123_v10  ;;  %v161_v12 = vpop.f32.mrb[1].mxu0 }
 0x107   :  { %127 = vst [vmem:[#allocation7] sm:$0xff] %v124_v11 }
 0x108   :  { %231 = shalt.err (!%p228_p6)
}
 0x109   :  { %s232_s16 = scalar_lea.hbm %s325_s3, 128 }
 0x10a   :  { %p233_p7 = scmp.ne.s32.totalorder %s325_s3, %s232_s16  ;;  %p236_p8 = scmp.lt.u32.totalorder %s232_s16, %s325_s3 }
 0x10c   :  { %p238_p9 = pnand %p236_p8, %p233_p7 }
 0x10e   :  { %241 = shalt.err (!%p238_p9)
}
 0x10f   :  { %137 = dma.vmem_to_hbm [thread:$0]  %s135_s12, 128, %s325_s3, [#allocation4]  }
 0x110   :  { %246 = dma.done.wait [#allocation4], 128  }
 0x111   :  { %247 = vsyncadd [#allocation4], 4294967168 }
 0x112   :  { %141 = vsyncpa [#allocation3], 1 }
 0x113   :  { %142 = vsyncpa [#allocation6], 1 }
 0x114   :  { %143 = vsyncpa [#allocation4], 1 }

</bundles_post_ra>
